<compile_context>
chip_gen: v7x
topology: tpu7x:2x2x1
jax: 0.10.0
libtpu: 0.0.40
codegen_flags: <defaults>
</compile_context>

<pallas_src>
import numpy as np
import jax
import jax.numpy as jnp
from jax.experimental import pallas as pl
from jax.experimental.pallas import tpu as pltpu


LANES = 128


# ----------------------------- Pallas kernels ------------------------------


def conv_bn_relu_kernel(p_ref, w_ref, scale_ref, shift_ref, out_ref):
    """out = relu((P @ W) * scale + shift); single MXU matmul, K = 9*Cin."""
    acc = jnp.dot(p_ref[...], w_ref[...], preferred_element_type=jnp.float32)
    y = acc * scale_ref[...] + shift_ref[...]
    out_ref[...] = jnp.maximum(y, 0.0).astype(out_ref.dtype)


def conv_bn_shortcut_add_relu_kernel(p_ref, w_ref, scale_ref, shift_ref,
                                     xs_ref, wsc_ref, ssc_ref, bsc_ref,
                                     out_ref):
    """Fused conv2+bn2 (K=9*planes) + shortcut 1x1conv+bn + add + relu."""
    main = jnp.dot(p_ref[...], w_ref[...], preferred_element_type=jnp.float32)
    main = main * scale_ref[...] + shift_ref[...]
    sc = jnp.dot(xs_ref[...], wsc_ref[...], preferred_element_type=jnp.float32)
    sc = sc * ssc_ref[...] + bsc_ref[...]
    out_ref[...] = jnp.maximum(main + sc, 0.0).astype(out_ref.dtype)


# ------------------------------- JAX glue ----------------------------------


def _round_up(x, m):
    return (x + m - 1) // m * m


def _pick_block_rows(m_rows):
    # Big tiles amortize per-grid-step overhead; cap small demo shapes so the
    # multi-step pipelined grid path is still exercised.
    for cand in (1024, 512, 256, 128, 64):
        if m_rows >= 2 * cand:
            return cand
    return min(64, _round_up(m_rows, 8))


def fold_bn(gamma, beta, mean, var, cpad, eps=1e-5):
    """Inference BN folded into per-channel scale/shift, zero-padded to cpad."""
    scale = gamma / jnp.sqrt(var + eps)
    shift = beta - mean * scale
    pad = cpad - scale.shape[0]
    scale = jnp.pad(scale, (0, pad)).reshape(1, cpad).astype(jnp.float32)
    shift = jnp.pad(shift, (0, pad)).reshape(1, cpad).astype(jnp.float32)
    return scale, shift


def im2col_3x3(x_nhwc, stride):
    """(N,H,W,C) -> (N*Hout*Wout, 9*C) patches for a pad=1 3x3 conv.

    Taps are concatenated along the channel (lane) axis so the entire 3x3
    reduction is a single K = 9*C contraction on the MXU.
    """
    N, H, W, C = x_nhwc.shape
    Hout = (H - 1) // stride + 1
    Wout = (W - 1) // stride + 1
    xp = jnp.pad(x_nhwc, ((0, 0), (1, 1), (1, 1), (0, 0)))
    taps = []
    for di in range(3):
        for dj in range(3):
            taps.append(jax.lax.slice(
                xp, (0, di, dj, 0),
                (N, di + stride * (Hout - 1) + 1,
                 dj + stride * (Wout - 1) + 1, C),
                (1, stride, stride, 1)))
    p = jnp.concatenate(taps, axis=-1)                 # (N, Hout, Wout, 9*C)
    return p.reshape(N * Hout * Wout, 9 * C), (Hout, Wout)


def conv_weight_to_matrix(w_oihw, cpad):
    """(Cout,Cin,kh,kw) -> (kh*kw*Cin, cpad), zero-padded along Cout."""
    cout = w_oihw.shape[0]
    w = jnp.transpose(w_oihw, (2, 3, 1, 0)).reshape(-1, cout)
    return jnp.pad(w, ((0, 0), (0, cpad - cout)))


def basic_block_forward(x_nchw, params, stride, *, block_rows=None,
                        dtype=jnp.bfloat16):
    """Pallas implementation of BasicBlock.forward. Input/output are NCHW."""
    x = jnp.transpose(x_nchw, (0, 2, 3, 1)).astype(jnp.float32)   # NHWC
    N, H, W, cin = x.shape
    planes = params["w1"].shape[0]
    cpad = _round_up(planes, LANES)

    xb = x.astype(dtype)                       # bf16 activations for the MXU

    # ---- conv1 (3x3, stride) + bn1 + relu ---------------------------------
    p1, (hout, wout) = im2col_3x3(xb, stride)
    m = N * hout * wout
    tm = block_rows or _pick_block_rows(m)
    mpad = _round_up(m, tm)
    grid = (mpad // tm,)

    p1 = jnp.pad(p1, ((0, mpad - m), (0, 0)))
    k1 = p1.shape[1]
    w1 = conv_weight_to_matrix(params["w1"], cpad).astype(dtype)
    s1, b1 = fold_bn(params["bn1_g"], params["bn1_b"],
                     params["bn1_m"], params["bn1_v"], cpad)

    def row_spec(k):       # tiled over M, lane-dense last dim
        return pl.BlockSpec((tm, k), lambda i: (i, 0))

    def const_spec(r, c):  # stays resident in VMEM across grid steps
        return pl.BlockSpec((r, c), lambda i: (0, 0))

    cparams = pltpu.CompilerParams(dimension_semantics=("parallel",))

    cost1 = pl.CostEstimate(
        flops=2 * mpad * k1 * cpad, transcendentals=0,
        bytes_accessed=int(p1.size * 2 + w1.size * 2 + 2 * cpad * 4
                           + mpad * cpad * 4))

    out1 = pl.pallas_call(
        conv_bn_relu_kernel,
        out_shape=jax.ShapeDtypeStruct((mpad, cpad), jnp.float32),
        grid=grid,
        in_specs=[row_spec(k1), const_spec(k1, cpad),
                  const_spec(1, cpad), const_spec(1, cpad)],
        out_specs=row_spec(cpad),
        compiler_params=cparams,
        cost_estimate=cost1,
    )(p1, w1, s1, b1)

    # ---- shortcut operands (fused into the second kernel) -----------------
    if stride != 1 or cin != planes:
        xs = xb[:, ::stride, ::stride, :].reshape(m, cin)
        wsc = conv_weight_to_matrix(params["wsc"], cpad).astype(dtype)
        ssc, bsc = fold_bn(params["bnsc_g"], params["bnsc_b"],
                           params["bnsc_m"], params["bnsc_v"], cpad)
    else:
        xs = xb.reshape(m, cin)
        wsc = jnp.pad(jnp.eye(cin, dtype=dtype), ((0, 0), (0, cpad - cin)))
        ssc = jnp.pad(jnp.ones((planes,), jnp.float32),
                      (0, cpad - planes)).reshape(1, cpad)
        bsc = jnp.zeros((1, cpad), jnp.float32)
    xs = jnp.pad(xs, ((0, mpad - m), (0, 0)))

    # ---- conv2 (3x3, stride 1) + bn2 + shortcut + add + relu --------------
    out1_nhwc = out1[:m, :planes].reshape(N, hout, wout, planes).astype(dtype)
    p2, _ = im2col_3x3(out1_nhwc, 1)
    p2 = jnp.pad(p2, ((0, mpad - m), (0, 0)))
    k2 = p2.shape[1]
    w2 = conv_weight_to_matrix(params["w2"], cpad).astype(dtype)
    s2, b2 = fold_bn(params["bn2_g"], params["bn2_b"],
                     params["bn2_m"], params["bn2_v"], cpad)

    cost2 = pl.CostEstimate(
        flops=2 * mpad * (k2 + cin) * cpad, transcendentals=0,
        bytes_accessed=int((p2.size + xs.size) * 2 + (w2.size + wsc.size) * 2
                           + 4 * cpad * 4 + mpad * cpad * 4))

    out = pl.pallas_call(
        conv_bn_shortcut_add_relu_kernel,
        out_shape=jax.ShapeDtypeStruct((mpad, cpad), jnp.float32),
        grid=grid,
        in_specs=[row_spec(k2), const_spec(k2, cpad),
                  const_spec(1, cpad), const_spec(1, cpad),
                  row_spec(cin), const_spec(cin, cpad),
                  const_spec(1, cpad), const_spec(1, cpad)],
        out_specs=row_spec(cpad),
        compiler_params=cparams,
        cost_estimate=cost2,
    )(p2, w2, s2, b2, xs, wsc, ssc, bsc)

    y = out[:m, :planes].reshape(N, hout, wout, planes)
    return jnp.transpose(y, (0, 3, 1, 2))                    # back to NCHW


# ------------------------- pure-JAX reference check ------------------------


def reference_forward(x_nchw, params, stride, in_planes, planes,
                      act_dtype=jnp.bfloat16):
    """XLA reference applying the same bf16 rounding points as the Pallas path
    (matmul inputs in bf16, accumulation / BN / residual / relu in f32)."""
    q = lambda t: t.astype(act_dtype).astype(jnp.float32)

    def conv(x, w, s, pad):
        return jax.lax.conv_general_dilated(
            q(x), q(w), (s, s), [(pad, pad), (pad, pad)],
            dimension_numbers=("NCHW", "OIHW", "NCHW"),
            precision=jax.lax.Precision.HIGHEST)

    def bn(x, g, b, m, v, eps=1e-5):
        g = g.reshape(1, -1, 1, 1); b = b.reshape(1, -1, 1, 1)
        m = m.reshape(1, -1, 1, 1); v = v.reshape(1, -1, 1, 1)
        return g * (x - m) / jnp.sqrt(v + eps) + b

    out = jax.nn.relu(bn(conv(x_nchw, params["w1"], stride, 1),
                         params["bn1_g"], params["bn1_b"],
                         params["bn1_m"], params["bn1_v"]))
    out = bn(conv(out, params["w2"], 1, 1),
             params["bn2_g"], params["bn2_b"],
             params["bn2_m"], params["bn2_v"])
    if stride != 1 or in_planes != planes:
        sc = bn(conv(x_nchw, params["wsc"], stride, 0),
                params["bnsc_g"], params["bnsc_b"],
                params["bnsc_m"], params["bnsc_v"])
    else:
        sc = q(x_nchw)
    return jax.nn.relu(out + sc)


# --------------------------------- main -------------------------------------


def make_params(key, in_planes, planes, stride):
    ks = iter(jax.random.split(key, 16))

    def bn_params(c):
        return (1.0 + 0.1 * jax.random.normal(next(ks), (c,), jnp.float32),
                0.1 * jax.random.normal(next(ks), (c,), jnp.float32),
                0.1 * jax.random.normal(next(ks), (c,), jnp.float32),
                0.5 + jax.random.uniform(next(ks), (c,), jnp.float32))

    p = {}
    p["w1"] = 0.1 * jax.random.normal(next(ks), (planes, in_planes, 3, 3),
                                      jnp.float32)
    p["bn1_g"], p["bn1_b"], p["bn1_m"], p["bn1_v"] = bn_params(planes)
    p["w2"] = 0.1 * jax.random.normal(next(ks), (planes, planes, 3, 3),
                                      jnp.float32)
    p["bn2_g"], p["bn2_b"], p["bn2_m"], p["bn2_v"] = bn_params(planes)
    if stride != 1 or in_planes != planes:
        p["wsc"] = 0.1 * jax.random.normal(next(ks),
                                           (planes, in_planes, 1, 1),
                                           jnp.float32)
        p["bnsc_g"], p["bnsc_b"], p["bnsc_m"], p["bnsc_v"] = bn_params(planes)
    return p


if __name__ == "__main__":
    fwd = jax.jit(basic_block_forward,
                  static_argnames=("stride", "block_rows", "dtype"))
    key = jax.random.PRNGKey(0)

    # Case 1: conv shortcut (in_planes=8 -> planes=16, stride=2).
    # Case 2: identity shortcut (in_planes=planes=16, stride=1).
    for (in_planes, planes, stride) in ((8, 16, 2), (16, 16, 1)):
        key, kx, kp = jax.random.split(key, 3)
        N, H, W = 2, 16, 16
        x = jax.random.normal(kx, (N, in_planes, H, W), jnp.float32)  # NCHW
        params = make_params(kp, in_planes, planes, stride)

        y = jax.block_until_ready(fwd(x, params, stride=stride))
        y_ref = reference_forward(x, params, stride, in_planes, planes)
        # Tolerance covers bf16 re-rounding of the intermediate activation at
        # the conv1->conv2 boundary (kernel and reference accumulate in f32).
        np.testing.assert_allclose(np.asarray(y), np.asarray(y_ref),
                                   rtol=2e-2, atol=2e-2)

    print("KERNEL_OK")
</pallas_src>

<mosaic_0001>
module attributes {stable_mosaic.version = 11 : i64} {
  func.func @conv_bn_relu_kernel(%arg0: i32, %arg1: memref<64x72xbf16, #tpu.memory_space<vmem>>, %arg2: memref<72x128xbf16, #tpu.memory_space<vmem>>, %arg3: memref<1x128xf32, #tpu.memory_space<vmem>>, %arg4: memref<1x128xf32, #tpu.memory_space<vmem>>, %arg5: memref<64x128xf32, #tpu.memory_space<vmem>>) attributes {dimension_semantics = [#tpu.dimension_semantics<parallel>], iteration_bounds = array<i64: 2>, scalar_prefetch = 0 : i64, scratch_operands = 0 : i64, tpu.core_type = #tpu.core_type<tc>, window_params = [{transform_indices = @transform_0, window_bounds = array<i64: 64, 72>}, {pipeline_mode = #tpu.pipeline_mode<synchronous>, transform_indices = @transform_1, window_bounds = array<i64: 72, 128>}, {pipeline_mode = #tpu.pipeline_mode<synchronous>, transform_indices = @transform_2, window_bounds = array<i64: 1, 128>}, {pipeline_mode = #tpu.pipeline_mode<synchronous>, transform_indices = @transform_3, window_bounds = array<i64: 1, 128>}, {transform_indices = @transform_4, window_bounds = array<i64: 64, 128>}]} {
    %c0 = arith.constant 0 : index
    %c0_0 = arith.constant 0 : index
    %0 = vector.load %arg1[%c0, %c0_0] : memref<64x72xbf16, #tpu.memory_space<vmem>>, vector<64x72xbf16>
    %c0_1 = arith.constant 0 : index
    %c0_2 = arith.constant 0 : index
    %1 = vector.load %arg2[%c0_1, %c0_2] : memref<72x128xbf16, #tpu.memory_space<vmem>>, vector<72x128xbf16>
    %cst = arith.constant dense<0.000000e+00> : vector<64x128xf32>
    %2 = tpu.matmul %0, %1, %cst {dimension_numbers = #tpu.dot_dimension_numbers<[1], [0], [0], [1], [0, 0, 1, 1], [], []>} : vector<64x72xbf16>, vector<72x128xbf16>, vector<64x128xf32> -> vector<64x128xf32>
    %c0_3 = arith.constant 0 : index
    %c0_4 = arith.constant 0 : index
    %3 = vector.load %arg3[%c0_3, %c0_4] : memref<1x128xf32, #tpu.memory_space<vmem>>, vector<1x128xf32>
    %4 = vector.broadcast %3 : vector<1x128xf32> to vector<64x128xf32>
    %5 = arith.mulf %2, %4 : vector<64x128xf32>
    %c0_5 = arith.constant 0 : index
    %c0_6 = arith.constant 0 : index
    %6 = vector.load %arg4[%c0_5, %c0_6] : memref<1x128xf32, #tpu.memory_space<vmem>>, vector<1x128xf32>
    %7 = vector.broadcast %6 : vector<1x128xf32> to vector<64x128xf32>
    %8 = arith.addf %5, %7 : vector<64x128xf32>
    %cst_7 = arith.constant 0.000000e+00 : f32
    %9 = vector.broadcast %cst_7 : f32 to vector<64x128xf32>
    %10 = arith.maximumf %8, %9 : vector<64x128xf32>
    %c0_8 = arith.constant 0 : index
    %c0_9 = arith.constant 0 : index
    %11 = vector.load %arg5[%c0_8, %c0_9] : memref<64x128xf32, #tpu.memory_space<vmem>>, vector<64x128xf32>
    tpu.vector_store %arg5[%c0_8, %c0_9], %10 {strides = array<i32>} : memref<64x128xf32, #tpu.memory_space<vmem>>, vector<64x128xf32>,
    return
  }
  func.func @transform_0(%arg0: i32) -> (i32, i32) {
    %c0_i32 = arith.constant 0 : i32
    %c0_i32_0 = arith.constant 0 : i32
    return %arg0, %c0_i32 : i32, i32
  }
  func.func @transform_1(%arg0: i32) -> (i32, i32) {
    %c0_i32 = arith.constant 0 : i32
    %c0_i32_0 = arith.constant 0 : i32
    %c0_i32_1 = arith.constant 0 : i32
    return %c0_i32, %c0_i32_0 : i32, i32
  }
  func.func @transform_2(%arg0: i32) -> (i32, i32) {
    %c0_i32 = arith.constant 0 : i32
    %c0_i32_0 = arith.constant 0 : i32
    %c0_i32_1 = arith.constant 0 : i32
    return %c0_i32, %c0_i32_0 : i32, i32
  }
  func.func @transform_3(%arg0: i32) -> (i32, i32) {
    %c0_i32 = arith.constant 0 : i32
    %c0_i32_0 = arith.constant 0 : i32
    %c0_i32_1 = arith.constant 0 : i32
    return %c0_i32, %c0_i32_0 : i32, i32
  }
  func.func @transform_4(%arg0: i32) -> (i32, i32) {
    %c0_i32 = arith.constant 0 : i32
    %c0_i32_0 = arith.constant 0 : i32
    return %arg0, %c0_i32 : i32, i32
  }
}

module attributes {stable_mosaic.version = 11 : i64} {
  func.func @conv_bn_shortcut_add_relu_kernel(%arg0: i32, %arg1: memref<64x144xbf16, #tpu.memory_space<vmem>>, %arg2: memref<144x128xbf16, #tpu.memory_space<vmem>>, %arg3: memref<1x128xf32, #tpu.memory_space<vmem>>, %arg4: memref<1x128xf32, #tpu.memory_space<vmem>>, %arg5: memref<64x8xbf16, #tpu.memory_space<vmem>>, %arg6: memref<8x128xbf16, #tpu.memory_space<vmem>>, %arg7: memref<1x128xf32, #tpu.memory_space<vmem>>, %arg8: memref<1x128xf32, #tpu.memory_space<vmem>>, %arg9: memref<64x128xf32, #tpu.memory_space<vmem>>) attributes {dimension_semantics = [#tpu.dimension_semantics<parallel>], iteration_bounds = array<i64: 2>, scalar_prefetch = 0 : i64, scratch_operands = 0 : i64, tpu.core_type = #tpu.core_type<tc>, window_params = [{transform_indices = @transform_0, window_bounds = array<i64: 64, 144>}, {pipeline_mode = #tpu.pipeline_mode<synchronous>, transform_indices = @transform_1, window_bounds = array<i64: 144, 128>}, {pipeline_mode = #tpu.pipeline_mode<synchronous>, transform_indices = @transform_2, window_bounds = array<i64: 1, 128>}, {pipeline_mode = #tpu.pipeline_mode<synchronous>, transform_indices = @transform_3, window_bounds = array<i64: 1, 128>}, {transform_indices = @transform_4, window_bounds = array<i64: 64, 8>}, {pipeline_mode = #tpu.pipeline_mode<synchronous>, transform_indices = @transform_5, window_bounds = array<i64: 8, 128>}, {pipeline_mode = #tpu.pipeline_mode<synchronous>, transform_indices = @transform_6, window_bounds = array<i64: 1, 128>}, {pipeline_mode = #tpu.pipeline_mode<synchronous>, transform_indices = @transform_7, window_bounds = array<i64: 1, 128>}, {transform_indices = @transform_8, window_bounds = array<i64: 64, 128>}]} {
    %c0 = arith.constant 0 : index
    %c0_0 = arith.constant 0 : index
    %0 = vector.load %arg1[%c0, %c0_0] : memref<64x144xbf16, #tpu.memory_space<vmem>>, vector<64x144xbf16>
    %c0_1 = arith.constant 0 : index
    %c0_2 = arith.constant 0 : index
    %1 = vector.load %arg2[%c0_1, %c0_2] : memref<144x128xbf16, #tpu.memory_space<vmem>>, vector<144x128xbf16>
    %cst = arith.constant dense<0.000000e+00> : vector<64x128xf32>
    %2 = tpu.matmul %0, %1, %cst {dimension_numbers = #tpu.dot_dimension_numbers<[1], [0], [0], [1], [0, 0, 1, 1], [], []>} : vector<64x144xbf16>, vector<144x128xbf16>, vector<64x128xf32> -> vector<64x128xf32>
    %c0_3 = arith.constant 0 : index
    %c0_4 = arith.constant 0 : index
    %3 = vector.load %arg3[%c0_3, %c0_4] : memref<1x128xf32, #tpu.memory_space<vmem>>, vector<1x128xf32>
    %4 = vector.broadcast %3 : vector<1x128xf32> to vector<64x128xf32>
    %5 = arith.mulf %2, %4 : vector<64x128xf32>
    %c0_5 = arith.constant 0 : index
    %c0_6 = arith.constant 0 : index
    %6 = vector.load %arg4[%c0_5, %c0_6] : memref<1x128xf32, #tpu.memory_space<vmem>>, vector<1x128xf32>
    %7 = vector.broadcast %6 : vector<1x128xf32> to vector<64x128xf32>
    %8 = arith.addf %5, %7 : vector<64x128xf32>
    %c0_7 = arith.constant 0 : index
    %c0_8 = arith.constant 0 : index
    %9 = vector.load %arg5[%c0_7, %c0_8] : memref<64x8xbf16, #tpu.memory_space<vmem>>, vector<64x8xbf16>
    %c0_9 = arith.constant 0 : index
    %c0_10 = arith.constant 0 : index
    %10 = vector.load %arg6[%c0_9, %c0_10] : memref<8x128xbf16, #tpu.memory_space<vmem>>, vector<8x128xbf16>
    %cst_11 = arith.constant dense<0.000000e+00> : vector<64x128xf32>
    %11 = tpu.matmul %9, %10, %cst_11 {dimension_numbers = #tpu.dot_dimension_numbers<[1], [0], [0], [1], [0, 0, 1, 1], [], []>} : vector<64x8xbf16>, vector<8x128xbf16>, vector<64x128xf32> -> vector<64x128xf32>
    %c0_12 = arith.constant 0 : index
    %c0_13 = arith.constant 0 : index
    %12 = vector.load %arg7[%c0_12, %c0_13] : memref<1x128xf32, #tpu.memory_space<vmem>>, vector<1x128xf32>
    %13 = vector.broadcast %12 : vector<1x128xf32> to vector<64x128xf32>
    %14 = arith.mulf %11, %13 : vector<64x128xf32>
    %c0_14 = arith.constant 0 : index
    %c0_15 = arith.constant 0 : index
    %15 = vector.load %arg8[%c0_14, %c0_15] : memref<1x128xf32, #tpu.memory_space<vmem>>, vector<1x128xf32>
    %16 = vector.broadcast %15 : vector<1x128xf32> to vector<64x128xf32>
    %17 = arith.addf %14, %16 : vector<64x128xf32>
    %18 = arith.addf %8, %17 : vector<64x128xf32>
    %cst_16 = arith.constant 0.000000e+00 : f32
    %19 = vector.broadcast %cst_16 : f32 to vector<64x128xf32>
    %20 = arith.maximumf %18, %19 : vector<64x128xf32>
    %c0_17 = arith.constant 0 : index
    %c0_18 = arith.constant 0 : index
    %21 = vector.load %arg9[%c0_17, %c0_18] : memref<64x128xf32, #tpu.memory_space<vmem>>, vector<64x128xf32>
    tpu.vector_store %arg9[%c0_17, %c0_18], %20 {strides = array<i32>} : memref<64x128xf32, #tpu.memory_space<vmem>>, vector<64x128xf32>,
    return
  }
  func.func @transform_0(%arg0: i32) -> (i32, i32) {
    %c0_i32 = arith.constant 0 : i32
    %c0_i32_0 = arith.constant 0 : i32
    return %arg0, %c0_i32 : i32, i32
  }
  func.func @transform_1(%arg0: i32) -> (i32, i32) {
    %c0_i32 = arith.constant 0 : i32
    %c0_i32_0 = arith.constant 0 : i32
    %c0_i32_1 = arith.constant 0 : i32
    return %c0_i32, %c0_i32_0 : i32, i32
  }
  func.func @transform_2(%arg0: i32) -> (i32, i32) {
    %c0_i32 = arith.constant 0 : i32
    %c0_i32_0 = arith.constant 0 : i32
    %c0_i32_1 = arith.constant 0 : i32
    return %c0_i32, %c0_i32_0 : i32, i32
  }
  func.func @transform_3(%arg0: i32) -> (i32, i32) {
    %c0_i32 = arith.constant 0 : i32
    %c0_i32_0 = arith.constant 0 : i32
    %c0_i32_1 = arith.constant 0 : i32
    return %c0_i32, %c0_i32_0 : i32, i32
  }
  func.func @transform_4(%arg0: i32) -> (i32, i32) {
    %c0_i32 = arith.constant 0 : i32
    %c0_i32_0 = arith.constant 0 : i32
    return %arg0, %c0_i32 : i32, i32
  }
  func.func @transform_5(%arg0: i32) -> (i32, i32) {
    %c0_i32 = arith.constant 0 : i32
    %c0_i32_0 = arith.constant 0 : i32
    %c0_i32_1 = arith.constant 0 : i32
    return %c0_i32, %c0_i32_0 : i32, i32
  }
  func.func @transform_6(%arg0: i32) -> (i32, i32) {
    %c0_i32 = arith.constant 0 : i32
    %c0_i32_0 = arith.constant 0 : i32
    %c0_i32_1 = arith.constant 0 : i32
    return %c0_i32, %c0_i32_0 : i32, i32
  }
  func.func @transform_7(%arg0: i32) -> (i32, i32) {
    %c0_i32 = arith.constant 0 : i32
    %c0_i32_0 = arith.constant 0 : i32
    %c0_i32_1 = arith.constant 0 : i32
    return %c0_i32, %c0_i32_0 : i32, i32
  }
  func.func @transform_8(%arg0: i32) -> (i32, i32) {
    %c0_i32 = arith.constant 0 : i32
    %c0_i32_0 = arith.constant 0 : i32
    return %arg0, %c0_i32 : i32, i32
  }
}

</mosaic_0001>

<bundles_post_ra>
// kernel: basic_block_forward.2
= control target key start
LH: loop header
LB: loop body
LE: loop exit
PB: predicated region body
PF: predicated region fallthrough
CT: control target
= control target key end

     0   :  { %s565_s15 = smov 0   ;;  %s611_s0 = inlined_call_operand.vmem [shape: bf16[128,72], index: 0, kind: input, shape index: {}]   ;;  %s612_s1 = inlined_call_operand.vmem [shape: bf16[72,128], index: 1, kind: input, shape index: {}]   ;;  %s613_s2 = inlined_call_operand.vmem [shape: f32[1,128], index: 2, kind: input, shape index: {}]   ;;  %s614_s3 = inlined_call_operand.vmem [shape: f32[1,128], index: 3, kind: input, shape index: {}]   ;;  %s615_s4 = inlined_call_operand.vmem [shape: f32[128,128], index: 4, kind: output, shape index: {}]  }
   0x1 LB: > { %s450_s16 = sadd.s32 4294967295, %s538_s15   ;;  %p454_p0 = scmp.ge.s32.totalorder %s538_s15, 1  ;;  %s538_s15 = sphi %s565_s15, %s14_s15  }
   0x2   : > { %p163_p1 = scmp.lt.s32.totalorder %s538_s15, 3 }
   0x4   : > { %p164_p2 = pnand %p454_p0, %p163_p1 }
   0x5   : > { %v523_v0 = vld [vmem:[%s612_s1] sm:$0xff] (!%p164_p2)   ;;  %v524_v1 = vld [vmem:[%s612_s1 + $0x8] sm:$0xff] (!%p164_p2)   ;;  %s455_s21 = sshll.u32 (!%p164_p2), %s450_s16, 3  ;;  %v525_v2 = vld [vmem:[%s612_s1 + $0x10] sm:$0xff] (!%p164_p2)   ;;  %vm266_vm0 = vcmask (!%p164_p2), 588800   ;;  %vm279_vm1 = vcmask (!%p164_p2), 1043456  }
   0x6   : > { %167 = sbr.rel (%p164_p2) target bundleno = 248 (0xf8), region = 36  ;;  %485 = vmatprep.subr.bf16.mxu0 (!%p164_p2), %v523_v0  ;;  %503 = vmatprep.subr.bf16.mxu1 (!%p164_p2), %v523_v0  ;;  %p190_p3 = scmp.lt.s32.totalorder (!%p164_p2), %s455_s21, 15  ;;  %v526_v3 = vld [vmem:[%s612_s1 + $0x18] sm:$0xff] (!%p164_p2)   ;;  %v527_v6 = vld [vmem:[%s612_s1 + $0x20] ss:$0 sps:$4 sm:$0xff] (!%p164_p2)  }
   0x7   : > { %486 = vmatpush3.bf16.msra.mxu0 (!%p164_p2), %v523_v0  ;;  %508 = vmatpush3.bf16.msra.mxu1 (!%p164_p2), %v523_v0  ;;  %v281_v7 = vsel (!%p164_p2), %vm279_vm1, %v527_v6, 0  ;;  %v472_v10 = vld [vmem:[%s613_s2] ss:$0 sm:$0xff] (!%p164_p2) }
   0x8   : > { %487 = vmatprep.subr.bf16.mxu0 (!%p164_p2), %v524_v1  ;;  %504 = vmatprep.subr.bf16.mxu1 (!%p164_p2), %v524_v1  ;;  %v473_v12 = vld [vmem:[%s614_s3] ss:$0 sm:$0xff] (!%p164_p2) }
   0xb   : > { %488 = vmatpush3.bf16.msra.mxu0 (!%p164_p2), %v524_v1  ;;  %509 = vmatpush3.bf16.msra.mxu1 (!%p164_p2), %v524_v1 }
   0xc   : > { %489 = vmatprep.subr.bf16.mxu0 (!%p164_p2), %v525_v2  ;;  %505 = vmatprep.subr.bf16.mxu1 (!%p164_p2), %v525_v2 }
   0xd   : > { %s617_s21 = smov (!%p190_p3, %s455_s21), 15 }
   0xe   : > { %s456_s24 = sshll.u32 %s617_s21, 2  ;;  %s458_s10 = sshll.u32 %s617_s21, 3 }
   0xf   : > { %s193_s29 = scalar_lea.vmem %s611_s0, %s456_s24  ;;  %490 = vmatpush3.bf16.msra.mxu0 %v525_v2  ;;  %510 = vmatpush3.bf16.msra.mxu1 %v525_v2  ;;  %s199_s13 = scalar_lea.vmem %s615_s4, %s458_s10 }
  0x10   : > { %v528_v4 = vld [vmem:[%s193_s29] sm:$0xff]   ;;  %v529_v5 = vld [vmem:[%s193_s29 + $0x10] sm:$0xff]   ;;  %491 = vmatprep.subr.bf16.mxu0 %v526_v3  ;;  %506 = vmatprep.subr.bf16.mxu1 %v526_v3  ;;  %v530_v8 = vld [vmem:[%s193_s29 + $0x8] sm:$0xff]  }
  0x11   : > { %495 = vmatprep.mubr.msk.bf16.mxu0 %vm266_vm0, %v528_v4  ;;  %499 = vmatprep.mubr.msk.bf16.mxu1 %vm266_vm0, %v529_v5  ;;  %v531_v9 = vld [vmem:[%s193_s29 + $0x18] sm:$0xff]  }
  0x13   : > { %492 = vmatpush3.bf16.msra.mxu0 %v526_v3  ;;  %511 = vmatpush3.bf16.msra.mxu1 %v526_v3 }
  0x14   : > { %513 = vmatprep.subr.msk.bf16.mxu0 %vm279_vm1, %v527_v6  ;;  %514 = vmatprep.subr.msk.bf16.mxu1 %vm279_vm1, %v527_v6 }
  0x17   : > { %494 = vmatpush3.bf16.msra.mxu0 %v281_v7  ;;  %512 = vmatpush3.bf16.msra.mxu1 %v281_v7 }
  0x1a   : > { %496 = vmatmul.mubr.msk.bf16.vlgmr.msra.gmra.mrb[0].mxu0 %vm266_vm0, %v530_v8  ;;  %500 = vmatmul.mubr.msk.bf16.vlgmr.msra.gmra.mrb[0].mxu1 %vm266_vm0, %v531_v9 }
  0xed   : > { %v497_v11 = vpop.f32.mrb[0].mxu0  ;;  %v501_v13 = vpop.f32.mrb[0].mxu1 }
  0xee   : > { %v357_v14 = vmul.f32 %v497_v11, %v472_v10  ;;  %v361_v15 = vmul.f32 %v501_v13, %v472_v10  ;;  %v317_v16 = vpop.f32.mrb[1].mxu0  ;;  %v333_v17 = vpop.f32.mrb[1].mxu1 }
  0xef   : > { %v355_v18 = vmul.f32 %v472_v10, %v317_v16  ;;  %v359_v19 = vmul.f32 %v472_v10, %v333_v17  ;;  %v498_v20 = vpop.f32.mrb[2].mxu0  ;;  %v502_v21 = vpop.f32.mrb[2].mxu1 }
  0xf0   : > { %v372_v22 = vadd.f32 %v473_v12, %v357_v14  ;;  %v376_v23 = vadd.f32 %v473_v12, %v361_v15  ;;  %v358_v24 = vmul.f32 %v498_v20, %v472_v10  ;;  %v362_v25 = vmul.f32 %v502_v21, %v472_v10  ;;  %v320_v26 = vpop.f32.mrb[3].mxu0  ;;  %v336_v27 = vpop.f32.mrb[3].mxu1 }
  0xf1   : > { %v370_v28 = vadd.f32 %v473_v12, %v355_v18  ;;  %v374_v29 = vadd.f32 %v473_v12, %v359_v19  ;;  %v356_v30 = vmul.f32 %v472_v10, %v320_v26  ;;  %v360_v31 = vmul.f32 %v472_v10, %v336_v27 }
  0xf2   : > { %v380_v32 = vmax.f32 %v372_v22, 0.0  ;;  %v384_v33 = vmax.f32 %v376_v23, 0.0  ;;  %v373_v34 = vadd.f32 %v473_v12, %v358_v24  ;;  %v377_v35 = vadd.f32 %v473_v12, %v362_v25 }
  0xf3   : > { %v378_v36 = vmax.f32 %v370_v28, 0.0  ;;  %v382_v37 = vmax.f32 %v374_v29, 0.0  ;;  %v371_v38 = vadd.f32 %v473_v12, %v356_v30  ;;  %v375_v39 = vadd.f32 %v473_v12, %v360_v31 }
  0xf4   : > { %388 = vst [vmem:[%s199_s13 + $0x10] sm:$0xff] %v380_v32  ;;  %392 = vst [vmem:[%s199_s13 + $0x30] sm:$0xff] %v384_v33  ;;  %v381_v40 = vmax.f32 %v373_v34, 0.0  ;;  %v385_v41 = vmax.f32 %v377_v35, 0.0 }
  0xf5   : > { %386 = vst [vmem:[%s199_s13] sm:$0xff] %v378_v36  ;;  %390 = vst [vmem:[%s199_s13 + $0x20] sm:$0xff] %v382_v37  ;;  %v379_v42 = vmax.f32 %v371_v38, 0.0  ;;  %v383_v43 = vmax.f32 %v375_v39, 0.0 }
  0xf6   : > { %389 = vst [vmem:[%s199_s13 + $0x18] sm:$0xff] %v381_v40  ;;  %393 = vst [vmem:[%s199_s13 + $0x38] sm:$0xff] %v385_v41 }
  0xf7   : > { %387 = vst [vmem:[%s199_s13 + $0x8] sm:$0xff] %v379_v42  ;;  %391 = vst [vmem:[%s199_s13 + $0x28] sm:$0xff] %v383_v43 }
  0xf8 PF: > { %s14_s15 = sadd.s32 1, %s538_s15  }
  0xf9   : > { %p11_p4 = scmp.ge.s32.totalorder %s14_s15, 4  }
  0xfb   :  { %13 = sbr.rel (!%p11_p4) target bundleno = 1 (0x1), region = 66 }

// kernel: basic_block_forward.3
= control target key start
LH: loop header
LB: loop body
LE: loop exit
PB: predicated region body
PF: predicated region fallthrough
CT: control target
= control target key end

     0   :  { %13 = vsyncpa [#allocation3], 0  ;;  %s1260_s0 = inlined_call_operand.vmem [shape: bf16[128,144], index: 0, kind: input, shape index: {}]   ;;  %s1261_s1 = inlined_call_operand.vmem [shape: bf16[144,128], index: 1, kind: input, shape index: {}]   ;;  %s1262_s2 = inlined_call_operand.vmem [shape: f32[1,128], index: 2, kind: input, shape index: {}]   ;;  %s1263_s3 = inlined_call_operand.vmem [shape: f32[1,128], index: 3, kind: input, shape index: {}]   ;;  %s1264_s4 = inlined_call_operand.vmem [shape: bf16[128,8], index: 4, kind: input, shape index: {}]   ;;  %s1265_s5 = inlined_call_operand.vmem [shape: bf16[8,128], index: 5, kind: input, shape index: {}]   ;;  %s1266_s6 = inlined_call_operand.vmem [shape: f32[1,128], index: 6, kind: input, shape index: {}]   ;;  %s1267_s7 = inlined_call_operand.vmem [shape: f32[1,128], index: 7, kind: input, shape index: {}]   ;;  %s1268_s8 = inlined_call_operand.hbm [shape: f32[128,128], index: 8, kind: output, shape index: {}]  }
   0x1   :  { %15 = vsyncpa [#allocation3 + $0x1], 0  ;;  %s1074_s27 = smov 0   ;;  %s1076_s28 = smov 0  }
   0x2   :  { %s1078_s29 = smov 0   ;;  %s1080_s30 = smov 0  }
   0x3 LB: > { %s1095_s9 = sadd.s32 4294967295, %s1023_s30   ;;  %s810_s10 = sadd.s32 4294967294, %s1023_s30   ;;  %s1023_s30 = sphi %s1080_s30, %s1274_s30   ;;  %s1019_s29 = sphi %s1078_s29, %s1273_s29   ;;  %s1015_s28 = sphi %s1076_s28, %s1272_s28   ;;  %s1011_s27 = sphi %s1074_s27, %s1271_s27  }
   0x4   : > { %s1099_s11 = sadd.s32 1, %s1023_s30   ;;  %s206_s12 = sadd.s32 1, %s1019_s29 }
   0x5   : > { %s203_s13 = ssub.s32 %s1023_s30, %s1099_s11  ;;  %p216_p0 = scmp.ne.s32.totalorder %s1019_s29, %s1015_s28 }
   0x6   : > { %p204_p1 = scmp.eq.s32.totalorder %s203_s13, 0  ;;  %p217_p2 = scmp.eq.s32.totalorder %s1095_s9, 1 }
   0x7   : > { %p222_p3 = scmp.ne.s32.totalorder %s1015_s28, %s1011_s27  ;;  %p223_p4 = scmp.eq.s32.totalorder %s810_s10, 1 }
   0x8   : > { %s1110_s14 = scalar_select %p204_p1, %s1019_s29, %s206_s12  }
   0x9   : > { %p1112_p5 = por %p217_p2, %p216_p0  ;;  %p1116_p6 = por %p223_p4, %p222_p3 }
   0xa   : > { %p813_p7 = scmp.ge.s32.totalorder %s1023_s30, 1  ;;  %p278_p8 = scmp.lt.s32.totalorder %s1023_s30, 3 }
   0xc   : > { %p279_p9 = pnand %p813_p7, %p278_p8 }
   0xd   : > { %v936_v0 = vld [vmem:[%s1261_s1] sm:$0xff] (!%p279_p9)   ;;  %v1025_v1 = vmov (!%p279_p9), 0   ;;  %s815_s19 = sshll.u32 (!%p279_p9), %s1095_s9, 3  ;;  %v937_v2 = vld [vmem:[%s1261_s1 + $0x8] sm:$0xff] (!%p279_p9)   ;;  %v938_v3 = vld [vmem:[%s1261_s1 + $0x10] sm:$0xff] (!%p279_p9)   ;;  %vm449_vm0 = vcmask (!%p279_p9), 130048  }
   0xe   : > { %282 = sbr.rel (%p279_p9) target bundleno = 304 (0x130), region = 52  ;;  %462 = vmatprep.subr.bf16.mxu0 (!%p279_p9), %v1025_v1  ;;  %875 = vmatprep.subr.bf16.mxu1 (!%p279_p9), %v1025_v1  ;;  %p319_p10 = scmp.lt.s32.totalorder (!%p279_p9), %s815_s19, 15  ;;  %v939_v4 = vld [vmem:[%s1261_s1 + $0x18] sm:$0xff] (!%p279_p9)   ;;  %v940_v7 = vld [vmem:[%s1261_s1 + $0x20] sm:$0xff] (!%p279_p9)   ;;  %v941_v8 = vld [vmem:[%s1261_s1 + $0x28] sm:$0xff] (!%p279_p9)   ;;  %vm599_vm1 = vcmask (!%p279_p9), 1043456  }
   0xf   : > { %463 = vmatpush1.bf16.msra.mxu0 (!%p279_p9), %v936_v0  ;;  %884 = vmatpush1.bf16.msra.mxu1 (!%p279_p9), %v936_v0  ;;  %v942_v9 = vld [vmem:[%s1261_s1 + $0x30] sm:$0xff] (!%p279_p9)   ;;  %v943_v10 = vld [vmem:[%s1261_s1 + $0x38] sm:$0xff] (!%p279_p9)   ;;  %v944_v11 = vld [vmem:[%s1261_s1 + $0x40] sm:$0xff] (!%p279_p9)   ;;  %vm586_vm2 = vcmask (!%p279_p9), 64512   ;;  %s859_s20 = sshll.u32 (!%p279_p9), %s1095_s9, 10 }
  0x10   : > { %464 = vmatprep.subr.bf16.mxu0 (!%p279_p9), %v1025_v1  ;;  %876 = vmatprep.subr.bf16.mxu1 (!%p279_p9), %v1025_v1  ;;  %v565_v12 = vld [vmem:[%s1265_s5] sm:$0xf] (!%p279_p9) }
  0x11   : > { %v601_v16 = vsel (!%p279_p9), %vm599_vm1, %v565_v12, 0  ;;  %v841_v32 = vld [vmem:[%s1262_s2] ss:$0 sm:$0xff] (!%p279_p9) }
  0x12   : > { %v851_v33 = vld [vmem:[%s1266_s6] ss:$0 sm:$0xff] (!%p279_p9) }
  0x13   : > { %465 = vmatpush1.bf16.msra.mxu0 (!%p279_p9), %v937_v2  ;;  %885 = vmatpush1.bf16.msra.mxu1 (!%p279_p9), %v937_v2  ;;  %v852_v37 = vld [vmem:[%s1267_s7] ss:$0 sm:$0xff] (!%p279_p9) }
  0x14   : > { %466 = vmatprep.subr.bf16.mxu0 (!%p279_p9), %v1025_v1  ;;  %877 = vmatprep.subr.bf16.mxu1 (!%p279_p9), %v1025_v1  ;;  %v842_v38 = vld [vmem:[%s1263_s3] ss:$0 sm:$0xff] (!%p279_p9) }
  0x15   : > { %s1276_s19 = smov (!%p319_p10, %s815_s19), 15 }
  0x16   : > { %s858_s24 = sshll.u32 %s1276_s19, 3  ;;  %s819_s17 = sshll.u32 %s1276_s19, 2 }
  0x17   : > { %s1135_s10 = scalar_lea.vmem %s1260_s0, %s858_s24  ;;  %467 = vmatpush1.bf16.msra.mxu0 %v938_v3  ;;  %886 = vmatpush1.bf16.msra.mxu1 %v938_v3  ;;  %s1145_s21 = scalar_lea.vmem %s1264_s4, %s819_s17 }
  0x18   : > { %v947_v5 = vld [vmem:[%s1135_s10 + $0x4] ss:$8 sps:$4 sm:$0xff]   ;;  %468 = vmatprep.subr.bf16.mxu0 %v1025_v1  ;;  %878 = vmatprep.subr.bf16.mxu1 %v1025_v1  ;;  %v950_v6 = vld [vmem:[%s1135_s10 + $0x34] ss:$8 sps:$4 sm:$0xff]   ;;  %v945_v13 = vld [vmem:[%s1135_s10] ss:$8 sps:$4 sm:$0xff]   ;;  %s1210_s24 = scalar_lea.hbm %s1268_s8, %s859_s20 }
  0x19   : > { %837 = vmatprep.mubr.msk.bf16.mxu0 %vm449_vm0, %v947_v5  ;;  %840 = vmatprep.mubr.msk.bf16.mxu1 %vm449_vm0, %v950_v6  ;;  %v948_v14 = vld [vmem:[%s1135_s10 + $0x30] ss:$8 sps:$4 sm:$0xff]   ;;  %v951_v15 = vld [vmem:[%s1135_s10 + $0x14] ss:$8 sps:$4 sm:$0xff]   ;;  %v953_v17 = vld [vmem:[%s1145_s21] sm:$0xff]  }
  0x1a   : > { %v954_v18 = vld [vmem:[%s1135_s10 + $0x10] ss:$8 sps:$4 sm:$0xff]   ;;  %v955_v19 = vld [vmem:[%s1145_s21 + $0x8] sm:$0xff]  }
  0x1b   : > { %469 = vmatpush1.bf16.msra.mxu0 %v939_v4  ;;  %887 = vmatpush1.bf16.msra.mxu1 %v939_v4  ;;  %v956_v20 = vld [vmem:[%s1135_s10 + $0x24] ss:$8 sps:$4 sm:$0xff]   ;;  %v958_v21 = vld [vmem:[%s1145_s21 + $0x10] sm:$0xff]   ;;  %v959_v22 = vld [vmem:[%s1135_s10 + $0x20] ss:$8 sps:$4 sm:$0xff]   ;;  %s315_s10 = sand.u32 1, %s1015_s28  }
  0x1c   : > { %470 = vmatprep.subr.bf16.mxu0 %v1025_v1  ;;  %879 = vmatprep.subr.bf16.mxu1 %v1025_v1  ;;  %v960_v23 = vld [vmem:[%s1145_s21 + $0x18] sm:$0xff]   ;;  %s814_s17 = sshll.u32 %s315_s10, 6  ;;  %s1219_s9 = scalar_lea.sflag [#allocation3], %s315_s10 }
  0x1d   : > { %s1198_s18 = scalar_lea.vmem [#allocation2], %s814_s17  ;;  %s1026_s21 = smov [#allocation2]  }
  0x1e   : > { %s736_s22 = sshll.u32 %s1198_s18, 4  ;;  %s965_s26 = sshll.u32 %s1026_s21, 4  ;;  %s1212_s22 = int_to_ptr.vmem [resolvable:$true] %s736_s22  ;;  %s966_s26 = int_to_ptr.vmem [resolvable:$false] %s965_s26 }
  0x1f   : > { %471 = vmatpush1.bf16.msra.mxu0 %v940_v7  ;;  %888 = vmatpush1.bf16.msra.mxu1 %v940_v7  ;;  %s961_s25 = scalar_lea.vmem %s1212_s22, 1024  ;;  %s967_s12 = scalar_lea.vmem %s966_s26, 2048 }
  0x20   : > { %472 = vmatprep.subr.bf16.mxu0 %v1025_v1  ;;  %880 = vmatprep.subr.bf16.mxu1 %v1025_v1  ;;  %p962_p11 = scmp.ne.s32.totalorder %s1212_s22, %s961_s25  ;;  %p968_p0 = scmp.lt.s32.totalorder %s1212_s22, %s966_s26 }
  0x21   : > { %p969_p1 = scmp.lt.s32.totalorder %s967_s12, %s961_s25 }
  0x22   : > { %p963_p12 = pnand %p962_p11, %p1112_p5 }
  0x23   : > { %473 = vmatpush1.bf16.msra.mxu0 %v941_v8  ;;  %889 = vmatpush1.bf16.msra.mxu1 %v941_v8  ;;  %p970_p2 = por %p969_p1, %p968_p0 }
  0x24   : > { %474 = vmatprep.subr.bf16.mxu0 %v1025_v1  ;;  %881 = vmatprep.subr.bf16.mxu1 %v1025_v1  ;;  %p964_p13 = pneg %p963_p12 }
  0x26   : > { %p971_p3 = pnand %p970_p2, %p964_p13 }
  0x27   : > { %475 = vmatpush1.bf16.msra.mxu0 %v942_v9  ;;  %890 = vmatpush1.bf16.msra.mxu1 %v942_v9 }
  0x28   : > { %476 = vmatprep.subr.bf16.mxu0 %v1025_v1  ;;  %882 = vmatprep.subr.bf16.mxu1 %v1025_v1 }
  0x2b   : > { %477 = vmatpush1.bf16.msra.mxu0 %v943_v10  ;;  %891 = vmatpush1.bf16.msra.mxu1 %v943_v10 }
  0x2c   : > { %478 = vmatprep.subr.bf16.mxu0 %v1025_v1  ;;  %883 = vmatprep.subr.bf16.mxu1 %v1025_v1 }
  0x2f   : > { %479 = vmatpush1.bf16.msra.mxu0 %v944_v11  ;;  %892 = vmatpush1.bf16.msra.mxu1 %v944_v11 }
  0x30   : > { %893 = vmatprep.subr.msk.bf16.mxu1 %vm599_vm1, %v565_v12 }
  0x32   : > { %495 = vmatmul.mubr.bf16.vlgmr.msra.gmra.mrb[0].mxu0 %v945_v13  ;;  %519 = vmatmul.mubr.bf16.vlgmr.msra.gmra.mrb[0].mxu1 %v948_v14 }
  0x33   : > { %866 = vmatpush3.bf16.msra.mxu1 %v601_v16  ;;  %838 = vmatprep.mubr.msk.bf16.mxu0 %vm449_vm0, %v951_v15 }
  0x34   : > { %867 = vmatprep.mubr.msk.bf16.mxu1 %vm586_vm2, %v953_v17 }
  0x3a   : > { %503 = vmatmul.mubr.bf16.gmra.mrb[4].mxu0 %v954_v18  ;;  %868 = vmatmul.mubr.msk.bf16.vlgmr.msra.gmra.mrb[4].mxu1 %vm586_vm2, %v955_v19 }
  0x3b   : > { %839 = vmatprep.mubr.msk.bf16.mxu0 %vm449_vm0, %v956_v20  ;;  %871 = vmatprep.mubr.msk.bf16.mxu1 %vm586_vm2, %v958_v21 }
  0x42   : > { %511 = vmatmul.mubr.bf16.gmra.mrb[8].mxu0 %v959_v22  ;;  %872 = vmatmul.mubr.msk.bf16.gmra.mrb[8].mxu1 %vm586_vm2, %v960_v23 }
 0x105   : > { %v496_v24 = vpop.f32.mrb[0].mxu0  ;;  %v520_v25 = vpop.f32.mrb[0].mxu1 }
 0x106   : > { %v498_v26 = vpop.f32.mrb[1].mxu0  ;;  %v522_v27 = vpop.f32.mrb[1].mxu1  ;;  %v534_v34 = vmul.f32 %v841_v32, %v496_v24  ;;  %v540_v59 = vmul.f32 %v841_v32, %v520_v25 }
 0x107   : > { %v499_v28 = vpop.f32.mrb[2].mxu0  ;;  %v523_v29 = vpop.f32.mrb[2].mxu1 }
 0x108   : > { %v501_v30 = vpop.f32.mrb[3].mxu0  ;;  %v525_v31 = vpop.f32.mrb[3].mxu1  ;;  %v535_v43 = vmul.f32 %v841_v32, %v499_v28  ;;  %v549_v53 = vadd.f32 %v842_v38, %v534_v34  ;;  %v541_v5 = vmul.f32 %v841_v32, %v523_v29  ;;  %v555_v11 = vadd.f32 %v842_v38, %v540_v59 }
 0x10a   : > { %v550_v60 = vadd.f32 %v842_v38, %v535_v43  ;;  %v556_v24 = vadd.f32 %v842_v38, %v541_v5 }
 0x10d   : > { %v504_v35 = vpop.f32.mrb[4].mxu0  ;;  %v869_v36 = vpop.f32.mrb[4].mxu1 }
 0x10e   : > { %v536_v39 = vmul.f32 %v841_v32, %v504_v35  ;;  %v677_v40 = vmul.f32 %v869_v36, %v851_v33  ;;  %v506_v41 = vpop.f32.mrb[5].mxu0  ;;  %v637_v42 = vpop.f32.mrb[5].mxu1 }
 0x10f   : > { %v675_v44 = vmul.f32 %v851_v33, %v637_v42  ;;  %v507_v45 = vpop.f32.mrb[6].mxu0  ;;  %v870_v46 = vpop.f32.mrb[6].mxu1 }
 0x110   : > { %v551_v47 = vadd.f32 %v842_v38, %v536_v39  ;;  %v692_v48 = vadd.f32 %v852_v37, %v677_v40  ;;  %v537_v49 = vmul.f32 %v841_v32, %v507_v45  ;;  %v678_v50 = vmul.f32 %v870_v46, %v851_v33  ;;  %v509_v51 = vpop.f32.mrb[7].mxu0  ;;  %v640_v52 = vpop.f32.mrb[7].mxu1 }
 0x111   : > { %v690_v54 = vadd.f32 %v852_v37, %v675_v44  ;;  %v676_v55 = vmul.f32 %v851_v33, %v640_v52 }
 0x112   : > { %v700_v56 = vadd.f32 %v692_v48, %v551_v47  ;;  %v552_v57 = vadd.f32 %v842_v38, %v537_v49  ;;  %v693_v58 = vadd.f32 %v852_v37, %v678_v50 }
 0x113   : > { %v698_v61 = vadd.f32 %v690_v54, %v549_v53  ;;  %v691_v62 = vadd.f32 %v852_v37, %v676_v55 }
 0x114   : > { %v708_v63 = vmax.f32 %v700_v56, 0.0  ;;  %v701_v0 = vadd.f32 %v693_v58, %v552_v57 }
 0x115   : > { %v706_v1 = vmax.f32 %v698_v61, 0.0  ;;  %v699_v2 = vadd.f32 %v691_v62, %v550_v60  ;;  %v512_v3 = vpop.f32.mrb[8].mxu0  ;;  %v873_v4 = vpop.f32.mrb[8].mxu1 }
 0x116   : > { %716 = vst [vmem:[%s1198_s18 + $0x10] sm:$0xff] %v708_v63  ;;  %v709_v6 = vmax.f32 %v701_v0, 0.0  ;;  %v538_v7 = vmul.f32 %v841_v32, %v512_v3  ;;  %v681_v8 = vmul.f32 %v873_v4, %v851_v33  ;;  %v514_v9 = vpop.f32.mrb[9].mxu0  ;;  %v653_v10 = vpop.f32.mrb[9].mxu1 }
 0x117   : > { %714 = vst [vmem:[%s1198_s18] sm:$0xff] %v706_v1  ;;  %v707_v12 = vmax.f32 %v699_v2, 0.0  ;;  %v679_v13 = vmul.f32 %v851_v33, %v653_v10  ;;  %v515_v14 = vpop.f32.mrb[10].mxu0  ;;  %v874_v15 = vpop.f32.mrb[10].mxu1 }
 0x118   : > { %717 = vst [vmem:[%s1198_s18 + $0x18] sm:$0xff] %v709_v6  ;;  %v553_v16 = vadd.f32 %v842_v38, %v538_v7  ;;  %v696_v17 = vadd.f32 %v852_v37, %v681_v8  ;;  %v539_v18 = vmul.f32 %v841_v32, %v515_v14  ;;  %v682_v19 = vmul.f32 %v874_v15, %v851_v33  ;;  %v517_v20 = vpop.f32.mrb[11].mxu0  ;;  %v656_v21 = vpop.f32.mrb[11].mxu1 }
 0x119   : > { %715 = vst [vmem:[%s1198_s18 + $0x8] sm:$0xff] %v707_v12  ;;  %v694_v22 = vadd.f32 %v852_v37, %v679_v13  ;;  %v680_v23 = vmul.f32 %v851_v33, %v656_v21 }
 0x11a   : > { %v704_v25 = vadd.f32 %v696_v17, %v555_v11  ;;  %v554_v26 = vadd.f32 %v842_v38, %v539_v18  ;;  %v697_v27 = vadd.f32 %v852_v37, %v682_v19 }
 0x11b   : > { %v702_v28 = vadd.f32 %v694_v22, %v553_v16  ;;  %v695_v29 = vadd.f32 %v852_v37, %v680_v23 }
 0x11c   : > { %v712_v30 = vmax.f32 %v704_v25, 0.0  ;;  %v705_v31 = vadd.f32 %v697_v27, %v556_v24 }
 0x11d   : > { %v710_v32 = vmax.f32 %v702_v28, 0.0  ;;  %v703_v34 = vadd.f32 %v695_v29, %v554_v26 }
 0x11e   : > { %720 = vst [vmem:[%s1198_s18 + $0x30] sm:$0xff] %v712_v30  ;;  %v713_v35 = vmax.f32 %v705_v31, 0.0 }
 0x11f   : > { %718 = vst [vmem:[%s1198_s18 + $0x20] sm:$0xff] %v710_v32  ;;  %v711_v33 = vmax.f32 %v703_v34, 0.0 }
 0x120   : > { %721 = vst [vmem:[%s1198_s18 + $0x38] sm:$0xff] %v713_v35 }
 0x121   : > { %719 = vst [vmem:[%s1198_s18 + $0x28] sm:$0xff] %v711_v33 }
 0x122   : > { %974 = shalt.err (!%p971_p3)
}
 0x123   : > { %s975_s10 = scalar_lea.hbm %s1210_s24, 1024  ;;  %s979_s18 = scalar_lea.hbm %s1268_s8, 2048 }
 0x124   : > { %p976_p4 = scmp.ne.s32.totalorder %s1210_s24, %s975_s10  ;;  %p980_p9 = scmp.lt.u32.totalorder %s1210_s24, %s1268_s8 }
 0x125   : > { %p981_p10 = scmp.lt.u32.totalorder %s979_s18, %s975_s10  ;;  %p983_p12 = scmp.lt.u32.totalorder %s975_s10, %s1210_s24 }
 0x126   : > { %p977_p7 = pnand %p976_p4, %p1112_p5 }
 0x127   : > { %p982_p11 = por %p981_p10, %p980_p9 }
 0x128   : > { %p978_p8 = pneg %p977_p7 }
 0x129   : > { %p984_p13 = por %p983_p12, %p982_p11 }
 0x12b   : > { %p985_p0 = pnand %p984_p13, %p978_p8 }
 0x12d   : > { %988 = shalt.err (!%p985_p0)
}
 0x12e   : > { %s1027_s23 = smov 128   ;;  %s1028_s25 = smov 8  }
 0x12f   : > { %894 = dma.vmem_to_hbm [thread:$0]  (%p1112_p5), %s1212_s22, 1024, %s1210_s24, %s1219_s9, %s1027_s23, %s1027_s23, %s1028_s25  }
 0x130 PF: > { %p900_p1 = scmp.ge.s32.totalorder %s1023_s30, 2  ;;  %s751_s21 = sand.u32 1, %s1011_s27  }
 0x131   : > { %s752_s26 = scalar_lea.sflag [#allocation3], %s751_s21 }
 0x132   : > { %p897_p2 = pnand %p900_p1, %p1116_p6 }
 0x134   : > { %1006 = dma.done.wait (!%p897_p2), %s752_s26, 1024  }
 0x135   : > { %1008 = vsyncadd (!%p897_p2), %s752_s26, 4294966272  ;;  %p18_p3 = scmp.ge.s32.totalorder %s1099_s11, 4   ;;  %s1271_s27 = smov %s1015_s28 }
 0x136   : > { %s1272_s28 = smov %s1019_s29  ;;  %s1273_s29 = smov %s1110_s14 }
 0x137   : > { %s1274_s30 = smov %s1099_s11  ;;  %20 = sbr.rel (!%p18_p3) target bundleno = 3 (0x3), region = 90 }
 0x13e   :  { %757 = vsyncpa [#allocation3], 1 }
 0x13f   :  { %759 = vsyncpa [#allocation3 + $0x1], 1 }

</bundles_post_ra>
